<compile_context>
chip_gen: v6e
topology: v6e:2x2x1
jax: 0.10.0
libtpu: 0.0.40
codegen_flags: <defaults>
</compile_context>

<pallas_src>
import jax
import jax.numpy as jnp
from jax.experimental import pallas as pl
from jax.experimental.pallas import tpu as pltpu


def fc_model_kernel(x_ref, w1_ref, b1_ref, w2_ref, b2_ref, amask_ref, o_ref):
    # layer1: cast the streamed f32 x tile to bf16 in-register (no extra HBM
    # pass); contract over K=126 directly (Mosaic zero-pads the ragged K tile).
    x = x_ref[...].astype(jnp.bfloat16)                              # (TB,126)
    h = jnp.dot(x, w1_ref[...], preferred_element_type=jnp.float32)  # (TB,128) f32
    h = jnp.maximum(h + b1_ref[...], 0.0)
    # layer2: (TB,128)bf16 @ (128,7)bf16 -> f32, + bias
    logits = jnp.dot(h.astype(jnp.bfloat16), w2_ref[...],
                     preferred_element_type=jnp.float32) + b2_ref[...]
    # action mask: raw (TB,8) streamed; use only the 7 real actions here
    a = amask_ref[:, :7]
    logits = logits + jnp.where(a > 0.5, 0.0, -10000.0)
    # softmax over the 7 actions (exact divide; normalization to f32 rounding)
    m = jnp.max(logits, axis=-1, keepdims=True)
    e = jnp.exp(logits - m)
    o_ref[...] = e / jnp.sum(e, axis=-1, keepdims=True)


def init_params(key):
    """nn.Linear-style init; weights stored transposed: (in_features, out_features)."""
    k1, k2, k3, k4 = jax.random.split(key, 4)
    in1, out1 = 6 * 7 * 3, 128
    in2, out2 = 128, 7
    bnd1 = 1.0 / jnp.sqrt(in1)
    bnd2 = 1.0 / jnp.sqrt(in2)
    w1 = jax.random.uniform(k1, (in1, out1), jnp.float32, -bnd1, bnd1)
    b1 = jax.random.uniform(k2, (1, out1), jnp.float32, -bnd1, bnd1)
    w2 = jax.random.uniform(k3, (in2, out2), jnp.float32, -bnd2, bnd2)
    b2 = jax.random.uniform(k4, (1, out2), jnp.float32, -bnd2, bnd2)
    return w1, b1, w2, b2


def prepare_params(params):
    """One-time: cast matmul weights to bf16 (biases stay f32)."""
    w1, b1, w2, b2 = params
    return w1.astype(jnp.bfloat16), b1, w2.astype(jnp.bfloat16), b2


def _call_kernel(x_flat, actions, prepared_params, tb):
    """One pallas_call over `x_flat.shape[0]` rows with batch tile `tb`
    (requires x_flat.shape[0] % tb == 0, or tb == x_flat.shape[0])."""
    w1, b1, w2, b2 = prepared_params
    rows = x_flat.shape[0]
    grid = (rows // tb,)
    return pl.pallas_call(
        fc_model_kernel,
        out_shape=jax.ShapeDtypeStruct((rows, 7), jnp.float32),
        grid=grid,
        in_specs=[
            pl.BlockSpec((tb, 126), lambda i: (i, 0)),    # x tile (streamed, f32)
            pl.BlockSpec((126, 128), lambda i: (0, 0)),   # w1 (resident, bf16)
            pl.BlockSpec((1, 128), lambda i: (0, 0)),     # b1 (resident, f32)
            pl.BlockSpec((128, 7), lambda i: (0, 0)),     # w2 (resident, bf16)
            pl.BlockSpec((1, 7), lambda i: (0, 0)),       # b2 (resident, f32)
            pl.BlockSpec((tb, 8), lambda i: (i, 0)),      # raw action mask tile
        ],
        out_specs=pl.BlockSpec((tb, 7), lambda i: (i, 0)),
        compiler_params=pltpu.CompilerParams(
            dimension_semantics=("parallel",)),
    )(x_flat, w1, b1, w2, b2, actions)


def fc_model_forward(x, actions, prepared_params, *, tb=4096):
    """x: (B, 6, 7, 3) float32, actions: (B, 8) float32 -> (B, 7) probs (float32)."""
    B = x.shape[0]
    x_flat = x.reshape(B, -1)                    # (B, 126) — free metadata reshape

    if B <= tb:
        # Single full-array block: no batch padding pass at all.
        return _call_kernel(x_flat, actions, prepared_params, B)

    TB = max(8, (tb // 8) * 8)                   # tile must be a sublane multiple
    n_main = (B // TB) * TB
    out_main = _call_kernel(x_flat[:n_main], actions[:n_main], prepared_params, TB)
    if n_main == B:
        return out_main
    # Small ragged tail as its own full-array-block call (avoids padding all of x).
    out_tail = _call_kernel(x_flat[n_main:], actions[n_main:], prepared_params,
                            B - n_main)
    return jnp.concatenate([out_main, out_tail], axis=0)


def reference_forward(x, actions, params):
    """Pure-JAX reference matching the PyTorch module (bf16 matmul operands,
    f32 accumulation — same numerics class as the kernel)."""
    w1, b1, w2, b2 = params
    B = x.shape[0]
    a = actions[:, :-1]
    xf = x.reshape(B, -1)
    h = jnp.dot(xf.astype(jnp.bfloat16), w1.astype(jnp.bfloat16),
                preferred_element_type=jnp.float32) + b1
    h = jnp.maximum(h, 0.0)
    logits = jnp.dot(h.astype(jnp.bfloat16), w2.astype(jnp.bfloat16),
                     preferred_element_type=jnp.float32) + b2
    logits = logits + jnp.where(a > 0.5, 0.0, -10000.0)
    return jax.nn.softmax(logits, axis=-1)


if __name__ == "__main__":
    key = jax.random.PRNGKey(0)
    kp, kx, ka = jax.random.split(key, 3)

    params = init_params(kp)
    prepared = prepare_params(params)

    B = 2
    # board observation: (B, 6, 7, 3) one-hot-ish floats
    x = jax.random.uniform(kx, (B, 6, 7, 3), jnp.float32)
    # action mask: (B, 8) of 0/1 floats (last column is the "pass" action)
    actions = (jax.random.uniform(ka, (B, 8)) > 0.3).astype(jnp.float32)

    out = fc_model_forward(x, actions, prepared)
    out = jax.block_until_ready(out)

    ref = reference_forward(x, actions, params)
    assert out.shape == (B, 7), f"bad shape {out.shape}"
    assert jnp.allclose(out, ref, atol=2e-3, rtol=2e-3), "mismatch vs reference"
    assert jnp.allclose(jnp.sum(out, axis=-1), 1.0, atol=2e-3), "probs must sum to 1"

    print("KERNEL_OK")
</pallas_src>

<mosaic_0001>
module attributes {stable_mosaic.version = 11 : i64} {
  func.func @fc_model_kernel(%arg0: i32, %arg1: memref<2x126xf32, #tpu.memory_space<vmem>>, %arg2: memref<126x128xbf16, #tpu.memory_space<vmem>>, %arg3: memref<1x128xf32, #tpu.memory_space<vmem>>, %arg4: memref<128x7xbf16, #tpu.memory_space<vmem>>, %arg5: memref<1x7xf32, #tpu.memory_space<vmem>>, %arg6: memref<2x8xf32, #tpu.memory_space<vmem>>, %arg7: memref<2x7xf32, #tpu.memory_space<vmem>>) attributes {dimension_semantics = [#tpu.dimension_semantics<parallel>], iteration_bounds = array<i64: 1>, scalar_prefetch = 0 : i64, scratch_operands = 0 : i64, tpu.core_type = #tpu.core_type<tc>, window_params = [{transform_indices = @transform_0, window_bounds = array<i64: 2, 126>}, {pipeline_mode = #tpu.pipeline_mode<synchronous>, transform_indices = @transform_1, window_bounds = array<i64: 126, 128>}, {pipeline_mode = #tpu.pipeline_mode<synchronous>, transform_indices = @transform_2, window_bounds = array<i64: 1, 128>}, {pipeline_mode = #tpu.pipeline_mode<synchronous>, transform_indices = @transform_3, window_bounds = array<i64: 128, 7>}, {pipeline_mode = #tpu.pipeline_mode<synchronous>, transform_indices = @transform_4, window_bounds = array<i64: 1, 7>}, {transform_indices = @transform_5, window_bounds = array<i64: 2, 8>}, {transform_indices = @transform_6, window_bounds = array<i64: 2, 7>}]} {
    %c0 = arith.constant 0 : index
    %c0_0 = arith.constant 0 : index
    %0 = vector.load %arg1[%c0, %c0_0] : memref<2x126xf32, #tpu.memory_space<vmem>>, vector<2x126xf32>
    %1 = arith.truncf %0 : vector<2x126xf32> to vector<2x126xbf16>
    %c0_1 = arith.constant 0 : index
    %c0_2 = arith.constant 0 : index
    %2 = vector.load %arg2[%c0_1, %c0_2] : memref<126x128xbf16, #tpu.memory_space<vmem>>, vector<126x128xbf16>
    %cst = arith.constant dense<0.000000e+00> : vector<2x128xf32>
    %3 = tpu.matmul %1, %2, %cst {dimension_numbers = #tpu.dot_dimension_numbers<[1], [0], [0], [1], [0, 0, 1, 1], [], []>} : vector<2x126xbf16>, vector<126x128xbf16>, vector<2x128xf32> -> vector<2x128xf32>
    %c0_3 = arith.constant 0 : index
    %c0_4 = arith.constant 0 : index
    %4 = vector.load %arg3[%c0_3, %c0_4] : memref<1x128xf32, #tpu.memory_space<vmem>>, vector<1x128xf32>
    %5 = vector.broadcast %4 : vector<1x128xf32> to vector<2x128xf32>
    %6 = arith.addf %3, %5 : vector<2x128xf32>
    %cst_5 = arith.constant 0.000000e+00 : f32
    %7 = vector.broadcast %cst_5 : f32 to vector<2x128xf32>
    %8 = arith.maximumf %6, %7 : vector<2x128xf32>
    %9 = arith.truncf %8 : vector<2x128xf32> to vector<2x128xbf16>
    %c0_6 = arith.constant 0 : index
    %c0_7 = arith.constant 0 : index
    %10 = vector.load %arg4[%c0_6, %c0_7] : memref<128x7xbf16, #tpu.memory_space<vmem>>, vector<128x7xbf16>
    %cst_8 = arith.constant dense<0.000000e+00> : vector<2x7xf32>
    %11 = tpu.matmul %9, %10, %cst_8 {dimension_numbers = #tpu.dot_dimension_numbers<[1], [0], [0], [1], [0, 0, 1, 1], [], []>} : vector<2x128xbf16>, vector<128x7xbf16>, vector<2x7xf32> -> vector<2x7xf32>
    %c0_9 = arith.constant 0 : index
    %c0_10 = arith.constant 0 : index
    %12 = vector.load %arg5[%c0_9, %c0_10] : memref<1x7xf32, #tpu.memory_space<vmem>>, vector<1x7xf32>
    %13 = vector.broadcast %12 : vector<1x7xf32> to vector<2x7xf32>
    %14 = arith.addf %11, %13 : vector<2x7xf32>
    %c0_11 = arith.constant 0 : index
    %c0_12 = arith.constant 0 : index
    %15 = vector.load %arg6[%c0_11, %c0_12] : memref<2x8xf32, #tpu.memory_space<vmem>>, vector<2x7xf32>
    %cst_13 = arith.constant 5.000000e-01 : f32
    %16 = vector.broadcast %cst_13 : f32 to vector<2x7xf32>
    %17 = arith.cmpf ogt, %15, %16 : vector<2x7xf32>
    %cst_14 = arith.constant 0.000000e+00 : f32
    %cst_15 = arith.constant -1.000000e+04 : f32
    %18 = vector.broadcast %cst_14 : f32 to vector<2x7xf32>
    %19 = vector.broadcast %cst_15 : f32 to vector<2x7xf32>
    %20 = arith.select %17, %18, %19 : vector<2x7xi1>, vector<2x7xf32>
    %21 = arith.addf %14, %20 : vector<2x7xf32>
    %cst_16 = arith.constant dense<0xFF800000> : vector<2xf32>
    %22 = vector.multi_reduction <maximumf>, %21, %cst_16 [1] : vector<2x7xf32> to vector<2xf32>
    %23 = vector.shape_cast %22 : vector<2xf32> to vector<2x1xf32>
    %24 = vector.broadcast %23 : vector<2x1xf32> to vector<2x7xf32>
    %25 = arith.subf %21, %24 : vector<2x7xf32>
    %26 = math.exp %25 : vector<2x7xf32>
    %cst_17 = arith.constant dense<0.000000e+00> : vector<2xf32>
    %27 = vector.multi_reduction <add>, %26, %cst_17 [1] : vector<2x7xf32> to vector<2xf32>
    %28 = vector.shape_cast %27 : vector<2xf32> to vector<2x1xf32>
    %29 = vector.broadcast %28 : vector<2x1xf32> to vector<2x7xf32>
    %30 = arith.divf %26, %29 : vector<2x7xf32>
    %c0_18 = arith.constant 0 : index
    %c0_19 = arith.constant 0 : index
    %31 = vector.load %arg7[%c0_18, %c0_19] : memref<2x7xf32, #tpu.memory_space<vmem>>, vector<2x7xf32>
    tpu.vector_store %arg7[%c0_18, %c0_19], %30 {strides = array<i32>} : memref<2x7xf32, #tpu.memory_space<vmem>>, vector<2x7xf32>,
    return
  }
  func.func @transform_0(%arg0: i32) -> (i32, i32) {
    %c0_i32 = arith.constant 0 : i32
    %c0_i32_0 = arith.constant 0 : i32
    return %arg0, %c0_i32 : i32, i32
  }
  func.func @transform_1(%arg0: i32) -> (i32, i32) {
    %c0_i32 = arith.constant 0 : i32
    %c0_i32_0 = arith.constant 0 : i32
    %c0_i32_1 = arith.constant 0 : i32
    return %c0_i32, %c0_i32_0 : i32, i32
  }
  func.func @transform_2(%arg0: i32) -> (i32, i32) {
    %c0_i32 = arith.constant 0 : i32
    %c0_i32_0 = arith.constant 0 : i32
    %c0_i32_1 = arith.constant 0 : i32
    return %c0_i32, %c0_i32_0 : i32, i32
  }
  func.func @transform_3(%arg0: i32) -> (i32, i32) {
    %c0_i32 = arith.constant 0 : i32
    %c0_i32_0 = arith.constant 0 : i32
    %c0_i32_1 = arith.constant 0 : i32
    return %c0_i32, %c0_i32_0 : i32, i32
  }
  func.func @transform_4(%arg0: i32) -> (i32, i32) {
    %c0_i32 = arith.constant 0 : i32
    %c0_i32_0 = arith.constant 0 : i32
    %c0_i32_1 = arith.constant 0 : i32
    return %c0_i32, %c0_i32_0 : i32, i32
  }
  func.func @transform_5(%arg0: i32) -> (i32, i32) {
    %c0_i32 = arith.constant 0 : i32
    %c0_i32_0 = arith.constant 0 : i32
    return %arg0, %c0_i32 : i32, i32
  }
  func.func @transform_6(%arg0: i32) -> (i32, i32) {
    %c0_i32 = arith.constant 0 : i32
    %c0_i32_0 = arith.constant 0 : i32
    return %arg0, %c0_i32 : i32, i32
  }
}

</mosaic_0001>

<bundles_post_ra>
// kernel: tpu_custom_call.1
= control target key start
LH: loop header
LB: loop body
LE: loop exit
PB: predicated region body
PF: predicated region fallthrough
CT: control target
= control target key end

     0   :  { %vm101_vm0 = vcmask 1046528   ;;  %v412_v0 = vmov 0.0   ;;  %vm413_vm1 = vmmov 0   ;;  %s517_s0 = inlined_call_operand.vmem [shape: f32[2,126], index: 0, kind: input, shape index: {}]   ;;  %s518_s1 = inlined_call_operand.vmem [shape: bf16[126,128], index: 1, kind: input, shape index: {}]   ;;  %s519_s2 = inlined_call_operand.vmem [shape: f32[1,128], index: 2, kind: input, shape index: {}]   ;;  %s520_s3 = inlined_call_operand.vmem [shape: bf16[128,7], index: 3, kind: input, shape index: {}]   ;;  %s521_s4 = inlined_call_operand.vmem [shape: f32[1,7], index: 4, kind: input, shape index: {}]   ;;  %s522_s5 = inlined_call_operand.vmem [shape: f32[2,8], index: 5, kind: input, shape index: {}]   ;;  %s523_s6 = inlined_call_operand.hbm [shape: f32[2,7], index: 6, kind: output, shape index: {}]  }
   0x1   :  { %326 = vmatprep.subr.bf16.mxu0 %v412_v0  ;;  %v370_v1 = vld [vmem:[%s518_s1 + $0x38] sm:$0x7f]   ;;  %346 = vmatprep.subr.bf16.mxu1 %v412_v0  ;;  %v371_v3 = vld [vmem:[%s518_s1 + $0x30] sm:$0xff]   ;;  %v372_v4 = vld [vmem:[%s518_s1 + $0x28] sm:$0xff]  }
   0x2   :  { %v103_v2 = vsel %vm101_vm0, %v370_v1, 0  ;;  %342 = vmatprep.mubr.msk.bf16.mxu0 %vm413_vm1, %v412_v0  ;;  %362 = vmatprep.mubr.msk.bf16.mxu1 %vm413_vm1, %v412_v0  ;;  %v378_v5 = vld [vmem:[%s520_s3 + $0x38] sm:$0xff]   ;;  %v379_v6 = vld [vmem:[%s520_s3 + $0x30] sm:$0xff]   ;;  %v373_v7 = vld [vmem:[%s518_s1 + $0x20] sm:$0xff]  }
   0x3   :  { %327 = vmatpush3.bf16.msra.mxu0 %v103_v2  ;;  %347 = vmatpush3.bf16.msra.mxu1 %v378_v5  ;;  %v380_v8 = vld [vmem:[%s520_s3 + $0x28] sm:$0xff]   ;;  %v374_v9 = vld [vmem:[%s518_s1 + $0x18] sm:$0xff]  }
   0x4   :  { %328 = vmatprep.subr.bf16.mxu0 %v412_v0  ;;  %348 = vmatprep.subr.bf16.mxu1 %v412_v0 }
   0x7   :  { %329 = vmatpush3.bf16.msra.mxu0 %v371_v3  ;;  %349 = vmatpush3.bf16.msra.mxu1 %v379_v6 }
   0x8   :  { %330 = vmatprep.subr.bf16.mxu0 %v412_v0  ;;  %350 = vmatprep.subr.bf16.mxu1 %v412_v0 }
   0xb   :  { %331 = vmatpush3.bf16.msra.mxu0 %v372_v4 }
   0xc   :  { %332 = vmatprep.subr.bf16.mxu0 %v412_v0 }
   0xf   :  { %333 = vmatpush3.bf16.msra.mxu0 %v373_v7 }
  0x10   :  { %11 = vsyncpa [#allocation3], 0  ;;  %334 = vmatprep.subr.bf16.mxu0 %v412_v0  ;;  %351 = vmatpush3.bf16.msra.mxu1 %v380_v8  ;;  %v381_v10 = vld [vmem:[%s520_s3 + $0x20] sm:$0xff]   ;;  %v375_v11 = vld [vmem:[%s518_s1 + $0x10] sm:$0xff]   ;;  %vm97_vm2 = vcmask 1031168   ;;  %v414_v31 = vmov -10000.0  }
  0x11   :  { %352 = vmatprep.subr.bf16.mxu1 %v412_v0  ;;  %v382_v12 = vld [vmem:[%s520_s3 + $0x18] sm:$0xff]   ;;  %v376_v13 = vld [vmem:[%s518_s1 + $0x8] sm:$0xff]   ;;  %v383_v14 = vld [vmem:[%s520_s3 + $0x10] sm:$0xff]   ;;  %vm262_vm4 = vcmask 50176  }
  0x12   :  { %v377_v15 = vld [vmem:[%s518_s1] sm:$0xff]   ;;  %v384_v18 = vld [vmem:[%s520_s3 + $0x8] sm:$0xff]  }
  0x13   :  { %335 = vmatpush3.bf16.msra.mxu0 %v374_v9  ;;  %v25_v16 = vld [vmem:[%s517_s0] sm:$0x3] }
  0x14   :  { %336 = vmatprep.subr.bf16.mxu0 %v412_v0  ;;  %353 = vmatpush3.bf16.msra.mxu1 %v381_v10  ;;  %v26_v17 = vpack.c.bf16 %v25_v16, %v25_v16  ;;  %v385_v19 = vld [vmem:[%s520_s3] sm:$0xff]  }
  0x15   :  { %354 = vmatprep.subr.bf16.mxu1 %v412_v0  ;;  %v289_v20 = vld [vmem:[%s519_s2] ss:$0 sm:$0xff]  ;;  %s415_s2 = smov [#allocation2]  }
  0x16   :  { %v258_v28 = vld [vmem:[%s522_s5] sm:$0x3] }
  0x17   :  { %337 = vmatpush3.bf16.msra.mxu0 %v375_v11  ;;  %vm259_vm3 = vcmp.gt.f32.partialorder %v258_v28, 0.5  ;;  %v299_v29 = vld [vmem:[%s521_s4] ss:$0 sm:$0xff]  ;;  %s281_s4 = sshll.u32 %s415_s2, 4  ;;  %s282_s4 = int_to_ptr.vmem [resolvable:$true] %s281_s4 }
  0x18   :  { %338 = vmatprep.subr.bf16.mxu0 %v412_v0  ;;  %355 = vmatpush3.bf16.msra.mxu1 %v382_v12  ;;  %v260_v32 = vsel %vm259_vm3, 0.0, %v414_v31  ;;  %s390_s5 = scalar_lea.vmem %s282_s4, 32  ;;  %p395_p1 = scmp.lt.s32.totalorder %s282_s4, %s282_s4 }
  0x19   :  { %356 = vmatprep.subr.bf16.mxu1 %v412_v0  ;;  %p391_p0 = scmp.ne.s32.totalorder %s282_s4, %s390_s5  ;;  %p396_p2 = scmp.lt.s32.totalorder %s390_s5, %s390_s5 }
  0x1b   :  { %339 = vmatpush3.bf16.msra.mxu0 %v376_v13  ;;  %p397_p3 = por %p396_p2, %p395_p1 }
  0x1c   :  { %340 = vmatprep.subr.bf16.mxu0 %v412_v0  ;;  %357 = vmatpush3.bf16.msra.mxu1 %v383_v14 }
  0x1d   :  { %358 = vmatprep.subr.bf16.mxu1 %v412_v0  ;;  %p398_p4 = pnand %p397_p3, %p391_p0 }
  0x1f   :  { %341 = vmatpush3.bf16.msra.mxu0 %v377_v15 }
  0x20   :  { %359 = vmatpush3.bf16.msra.mxu1 %v384_v18 }
  0x21   :  { %360 = vmatprep.subr.bf16.mxu1 %v412_v0 }
  0x22   :  { %343 = vmatmul.mubr.msk.bf16.vlgmr.msra.gmra.mxu0 %vm97_vm2, %v26_v17 }
  0x24   :  { %361 = vmatpush3.bf16.msra.mxu1 %v385_v19 }
  0xe2   :  { %v139_v21 = vpop.f32.mrf.mxu0 }
  0xe3   :  { %v140_v22 = vadd.f32 %v289_v20, %v139_v21 }
  0xe4   :  { %v344_v23 = vpop.f32.mrf.mxu0 }
  0xe5   :  { %v145_v24 = vmax.f32 %v140_v22, 0.0 }
  0xe6   :  { %v142_v25 = vpop.f32.mrf.mxu0 }
  0xe7   :  { %v146_v26 = vpack.c.bf16 %v145_v24, %v145_v24 }
  0xe8   :  { %v345_v27 = vpop.f32.mrf.mxu0 }
  0xe9   :  { %363 = vmatmul.mubr.bf16.vlgmr.msra.gmra.mxu1 %v146_v26 }
 0x1a9   :  { %v252_v30 = vpop.f32.mrf.mxu1 }
 0x1aa   :  { %v253_v33 = vadd.f32 %v299_v29, %v252_v30 }
 0x1ab   :  { %v364_v34 = vpop.f32.mrf.mxu1 }
 0x1ac   :  { %v261_v35 = vadd.f32 %v260_v32, %v253_v33 }
 0x1ad   :  { %v255_v36 = vpop.f32.mrf.mxu1 }
 0x1ae   :  { %v263_v37 = vsel %vm262_vm4, %v261_v35, -inf }
 0x1af   :  { %264 = vmax.xlane.f32.xlu0 %v263_v37  ;;  %v365_v38 = vpop.f32.mrf.mxu1 }
 0x238   :  { %v265_v39 = vpop.xlane.xlu0 %264 }
 0x239   :  { %v266_v40 = vsub.f32 %v261_v35, %v265_v39 }
 0x23b   :  { %v267_v41 = vmul.f32 1.442695, %v266_v40 }
 0x23d   :  { %386 = vpow2.f32 %v267_v41 }
 0x24a   :  { %v387_v42 = vpop.eup %386 }
 0x24b   :  { %v269_v43 = vsel %vm262_vm4, %v387_v42, 0.0 }
 0x24c   :  { %270 = vadd.xlane.f32.xlu0 %v269_v43 }
 0x2d5   :  { %v271_v44 = vpop.xlane.xlu0 %270 }
 0x2d6   :  { %388 = vrcp.f32 %v271_v44 }
 0x2e3   :  { %v389_v45 = vpop.eup %388 }
 0x2e4   :  { %v273_v46 = vmul.f32 %v389_v45, %v387_v42 }
 0x2e6   :  { %274 = vst.msk [vmem:[#allocation2] sm:$0x3] %vm262_vm4, %v273_v46 }
 0x2e7   :  { %401 = shalt.err (!%p398_p4)
}
 0x2e8   :  { %284 = dma.vmem_to_hbm [thread:$0]  %s282_s4, 32, %s523_s6, [#allocation3]  }
 0x2e9   :  { %410 = dma.done.wait [#allocation3], 32  }
 0x2ea   :  { %411 = vsyncadd [#allocation3], 4294967264 }
 0x2eb   :  { %288 = vsyncpa [#allocation3], 1 }

</bundles_post_ra>
